<compile_context>
chip_gen: v5e
topology: v5e:2x2
jax: 0.10.0
libtpu: 0.0.40
codegen_flags: <defaults>
</compile_context>

<pallas_src>
import functools

import jax
import jax.numpy as jnp
from jax.experimental import pallas as pl
from jax.experimental.pallas import tpu as pltpu


def _nw_kernel(w_ref, q_ref, k_ref, v_ref, o_ref, m_sc, l_sc, num_sc):
    # w_ref: SMEM (1,) learnable scalar; q_ref: (tq, 1); k_ref/v_ref: (tq, tk);
    # o_ref: (tq, 1); m_sc/l_sc/num_sc: (tq, 1) f32 VMEM accumulators.
    j = pl.program_id(1)

    @pl.when(j == 0)
    def _():
        m_sc[...] = jnp.full_like(m_sc, -jnp.inf)
        l_sc[...] = jnp.zeros_like(l_sc)
        num_sc[...] = jnp.zeros_like(num_sc)

    w = w_ref[0]
    c = -0.5 * w * w                               # hoisted scalar: scores = (d*d)*c
    q = q_ref[...].astype(jnp.float32)             # (tq, 1)
    k = k_ref[...].astype(jnp.float32)             # (tq, tk) bf16 inputs cast here
    v = v_ref[...].astype(jnp.float32)             # (tq, tk)

    d = q - k                                      # broadcast query over key axis
    scores = (d * d) * c                           # -((q-k)*w)^2 / 2, always <= 0

    # Online softmax over nk chunks (numerically stable for any learnable w).
    m_prev = m_sc[...]
    m_new = jnp.maximum(m_prev, scores.max(axis=1, keepdims=True))
    alpha = jnp.exp(m_prev - m_new)                # rescale previous chunks
    p = jnp.exp(scores - m_new)                    # EUP; in (0, 1]
    l_sc[...] = alpha * l_sc[...] + p.sum(axis=1, keepdims=True)
    num_sc[...] = alpha * num_sc[...] + (p * v).sum(axis=1, keepdims=True)
    m_sc[...] = m_new

    @pl.when(j == pl.num_programs(1) - 1)
    def _():
        # den >= 1 after the final rescaling, so approx reciprocal is safe.
        # (Use approx=False if this feeds a loss needing tighter than ~1e-3.)
        o_ref[...] = (num_sc[...] * pl.reciprocal(l_sc[...], approx=True)
                      ).astype(o_ref.dtype)


def _pick_tiles(nq, nk, kv_itemsize):
    """Choose (tq, tk): key chunk tk (lane-aligned divisor of nk) and query tile tq
    (sublane-packing-aligned divisor of nq under a VMEM budget, >= 2 grid steps)."""
    # Key-axis chunk: multiple of 128 dividing nk, <= 1024 lanes; else full nk.
    tk = nk
    if nk > 1024 and nk % 128 == 0:
        for t in range(1024, 127, -128):
            if nk % t == 0:
                tk = t
                break
    # TODO(synk): nk > 1024 and not a multiple of 128 -> pad + mask the key axis
    # instead of a single full-width chunk.

    # Per-query-row VMEM bytes: double-buffered k/v blocks + in-kernel f32
    # intermediates (casted k/v, d, scores, p, p*v) + lane-padded (tq,1) buffers.
    step = max(8, 32 // kv_itemsize)               # 8 f32, 16 bf16, 32 int8
    per_row = 2 * 2 * tk * kv_itemsize + 6 * tk * 4 + 8 * 128 * 4
    budget = 20 * 1024 * 1024                      # v7x-safe (64 MiB physical VMEM)
    cap = max(step, min(budget // per_row, 1024))
    if nq >= 2 * step:                             # keep >= 2 grid steps so both
        cap = min(cap, (nq // 2) - ((nq // 2) % step))   # v7x TensorCores get work
    cap = max(cap, step)

    if nq <= cap:
        return nq, tk
    t0 = cap - cap % step
    for t in range(t0, step - 1, -step):
        if nq % t == 0:
            return t, tk
    # TODO(synk): ragged nq with no aligned divisor -> pad nq + mask instead of
    # falling back to a single (possibly VMEM-heavy) grid step.
    return nq, tk


@functools.partial(jax.jit, static_argnames=("tq", "tk"))
def nw_kernel_regression(queries, keys, values, w, *, tq=None, tk=None):
    """queries: (nq,), keys/values: (nq, nk) [f32 or bf16], w: (1,) f32 -> (nq,) f32."""
    nq = queries.shape[0]
    nk = keys.shape[1]
    kv_itemsize = jnp.dtype(keys.dtype).itemsize
    q_itemsize = jnp.dtype(queries.dtype).itemsize

    auto_tq, auto_tk = _pick_tiles(nq, nk, kv_itemsize)
    if tq is None:
        tq = auto_tq
    if tk is None:
        tk = auto_tk
    assert nq % tq == 0 and nk % tk == 0
    grid_q, grid_k = nq // tq, nk // tk

    q2 = queries.reshape(nq, 1)                    # metadata-only reshape

    # VMEM need: double-buffered k/v blocks, in-kernel f32 intermediates,
    # lane-padded (tq,1) q/out/scratch buffers, plus slack.
    vmem_need = (2 * 2 * tq * tk * kv_itemsize + 6 * tq * tk * 4
                 + 8 * tq * 128 * 4 + (2 << 20))
    params = {"dimension_semantics": ("parallel", "arbitrary")}
    if vmem_need > 16 * 1024 * 1024:               # smallest (v5e) scoped default
        # Never below the v6e/v7x 32 MiB default; never above v7x's 64 MiB physical.
        params["vmem_limit_bytes"] = int(
            min(max(32 * 1024 * 1024, vmem_need * 5 // 4), 64 * 1024 * 1024))

    cost = pl.CostEstimate(
        flops=7 * nq * nk,
        transcendentals=nq * nk,
        bytes_accessed=2 * nq * nk * kv_itemsize + nq * (q_itemsize + 4) + 4,
    )

    out = pl.pallas_call(
        _nw_kernel,
        out_shape=jax.ShapeDtypeStruct((nq, 1), jnp.float32),
        grid=(grid_q, grid_k),
        in_specs=[
            pl.BlockSpec(memory_space=pltpu.MemorySpace.SMEM),   # scalar param w
            pl.BlockSpec((tq, 1), lambda i, j: (i, 0)),          # queries (column)
            pl.BlockSpec((tq, tk), lambda i, j: (i, j)),         # keys chunk
            pl.BlockSpec((tq, tk), lambda i, j: (i, j)),         # values chunk
        ],
        out_specs=pl.BlockSpec((tq, 1), lambda i, j: (i, 0)),    # resident across j
        scratch_shapes=[
            pltpu.VMEM((tq, 1), jnp.float32),                    # running max m
            pltpu.VMEM((tq, 1), jnp.float32),                    # denominator l
            pltpu.VMEM((tq, 1), jnp.float32),                    # weighted numerator
        ],
        compiler_params=pltpu.CompilerParams(**params),
        cost_estimate=cost,
    )(w.astype(jnp.float32), q2, keys, values)
    return out.reshape(nq)


def _reference(queries, keys, values, w):
    scores = -0.5 * ((queries[:, None] - keys) * w[0]) ** 2
    attn = jax.nn.softmax(scores, axis=1)
    return jnp.sum(attn * values, axis=1)


if __name__ == "__main__":
    key = jax.random.PRNGKey(0)
    k_q, k_k, k_v, k_w = jax.random.split(key, 4)

    nq, nk = 64, 128
    queries = jax.random.uniform(k_q, (nq,), jnp.float32) * 5.0
    keys = jax.random.uniform(k_k, (nq, nk), jnp.float32) * 5.0
    values = jax.random.normal(k_v, (nq, nk), jnp.float32)
    # Single learnable scalar parameter w (torch: nn.Parameter(torch.rand((1,)))).
    w = jax.random.uniform(k_w, (1,), jnp.float32)

    # f32 path
    out = jax.block_until_ready(nw_kernel_regression(queries, keys, values, w))
    ref = _reference(queries, keys, values, w)
    assert out.shape == (nq,)
    assert jnp.allclose(out, ref, atol=2e-3, rtol=2e-3), "f32 mismatch vs reference"

    # bf16 keys/values path (halved HBM traffic; math is still f32 in-kernel)
    keys_bf16 = keys.astype(jnp.bfloat16)
    values_bf16 = values.astype(jnp.bfloat16)
    out_bf16 = jax.block_until_ready(
        nw_kernel_regression(queries, keys_bf16, values_bf16, w))
    ref_bf16 = _reference(queries, keys_bf16.astype(jnp.float32),
                          values_bf16.astype(jnp.float32), w)
    assert jnp.allclose(out_bf16, ref_bf16, atol=2e-3, rtol=2e-3), "bf16 mismatch"

    print("KERNEL_OK")
</pallas_src>

<mosaic_0001>
module attributes {stable_mosaic.version = 11 : i64} {
  func.func @_nw_kernel(%arg0: i32, %arg1: i32, %arg2: memref<1xf32, #tpu.memory_space<smem>>, %arg3: memref<32x1xf32, #tpu.memory_space<vmem>>, %arg4: memref<32x128xf32, #tpu.memory_space<vmem>>, %arg5: memref<32x128xf32, #tpu.memory_space<vmem>>, %arg6: memref<32x1xf32, #tpu.memory_space<vmem>>, %arg7: memref<32x1xf32, #tpu.memory_space<vmem>>, %arg8: memref<32x1xf32, #tpu.memory_space<vmem>>, %arg9: memref<32x1xf32, #tpu.memory_space<vmem>>) attributes {dimension_semantics = [#tpu.dimension_semantics<parallel>, #tpu.dimension_semantics<arbitrary>], iteration_bounds = array<i64: 2, 1>, scalar_prefetch = 0 : i64, scratch_operands = 3 : i64, tpu.core_type = #tpu.core_type<tc>, window_params = [{transform_indices = @transform_0, window_bounds = array<i64: 1>}, {transform_indices = @transform_1, window_bounds = array<i64: 32, 1>}, {transform_indices = @transform_2, window_bounds = array<i64: 32, 128>}, {transform_indices = @transform_3, window_bounds = array<i64: 32, 128>}, {transform_indices = @transform_4, window_bounds = array<i64: 32, 1>}]} {
    %c0_i32 = arith.constant 0 : i32
    %0 = arith.cmpi eq, %arg1, %c0_i32 : i32
    %1 = arith.extui %0 : i1 to i32
    %c0_i32_0 = arith.constant 0 : i32
    %2 = arith.cmpi ne, %1, %c0_i32_0 : i32
    scf.if %2 {
      %cst_24 = arith.constant 0xFF800000 : f32
      %40 = vector.broadcast %cst_24 : f32 to vector<32x1xf32>
      %c0_25 = arith.constant 0 : index
      %c0_26 = arith.constant 0 : index
      %41 = vector.load %arg7[%c0_25, %c0_26] : memref<32x1xf32, #tpu.memory_space<vmem>>, vector<32x1xf32>
      tpu.vector_store %arg7[%c0_25, %c0_26], %40 {strides = array<i32>} : memref<32x1xf32, #tpu.memory_space<vmem>>, vector<32x1xf32>,
      %cst_27 = arith.constant 0.000000e+00 : f32
      %42 = vector.broadcast %cst_27 : f32 to vector<32x1xf32>
      %c0_28 = arith.constant 0 : index
      %c0_29 = arith.constant 0 : index
      %43 = vector.load %arg8[%c0_28, %c0_29] : memref<32x1xf32, #tpu.memory_space<vmem>>, vector<32x1xf32>
      tpu.vector_store %arg8[%c0_28, %c0_29], %42 {strides = array<i32>} : memref<32x1xf32, #tpu.memory_space<vmem>>, vector<32x1xf32>,
      %cst_30 = arith.constant 0.000000e+00 : f32
      %44 = vector.broadcast %cst_30 : f32 to vector<32x1xf32>
      %c0_31 = arith.constant 0 : index
      %c0_32 = arith.constant 0 : index
      %45 = vector.load %arg9[%c0_31, %c0_32] : memref<32x1xf32, #tpu.memory_space<vmem>>, vector<32x1xf32>
      tpu.vector_store %arg9[%c0_31, %c0_32], %44 {strides = array<i32>} : memref<32x1xf32, #tpu.memory_space<vmem>>, vector<32x1xf32>,
    } else {
    }
    %c0 = arith.constant 0 : index
    %3 = memref.load %arg2[%c0] : memref<1xf32, #tpu.memory_space<smem>>
    %cst = arith.constant -5.000000e-01 : f32
    %4 = arith.mulf %cst, %3 : f32
    %5 = arith.mulf %4, %3 : f32
    %c0_1 = arith.constant 0 : index
    %c0_2 = arith.constant 0 : index
    %6 = vector.load %arg3[%c0_1, %c0_2] : memref<32x1xf32, #tpu.memory_space<vmem>>, vector<32x1xf32>
    %c0_3 = arith.constant 0 : index
    %c0_4 = arith.constant 0 : index
    %7 = vector.load %arg4[%c0_3, %c0_4] : memref<32x128xf32, #tpu.memory_space<vmem>>, vector<32x128xf32>
    %c0_5 = arith.constant 0 : index
    %c0_6 = arith.constant 0 : index
    %8 = vector.load %arg5[%c0_5, %c0_6] : memref<32x128xf32, #tpu.memory_space<vmem>>, vector<32x128xf32>
    %9 = vector.broadcast %6 : vector<32x1xf32> to vector<32x128xf32>
    %10 = arith.subf %9, %7 : vector<32x128xf32>
    %11 = arith.mulf %10, %10 : vector<32x128xf32>
    %12 = vector.broadcast %5 : f32 to vector<32x128xf32>
    %13 = arith.mulf %11, %12 : vector<32x128xf32>
    %c0_7 = arith.constant 0 : index
    %c0_8 = arith.constant 0 : index
    %14 = vector.load %arg7[%c0_7, %c0_8] : memref<32x1xf32, #tpu.memory_space<vmem>>, vector<32x1xf32>
    %cst_9 = arith.constant dense<0xFF800000> : vector<32xf32>
    %15 = vector.multi_reduction <maximumf>, %13, %cst_9 [1] : vector<32x128xf32> to vector<32xf32>
    %16 = vector.shape_cast %15 : vector<32xf32> to vector<32x1xf32>
    %17 = arith.maximumf %14, %16 : vector<32x1xf32>
    %18 = arith.subf %14, %17 : vector<32x1xf32>
    %19 = math.exp %18 : vector<32x1xf32>
    %20 = vector.broadcast %17 : vector<32x1xf32> to vector<32x128xf32>
    %21 = arith.subf %13, %20 : vector<32x128xf32>
    %22 = math.exp %21 : vector<32x128xf32>
    %c0_10 = arith.constant 0 : index
    %c0_11 = arith.constant 0 : index
    %23 = vector.load %arg8[%c0_10, %c0_11] : memref<32x1xf32, #tpu.memory_space<vmem>>, vector<32x1xf32>
    %24 = arith.mulf %19, %23 : vector<32x1xf32>
    %cst_12 = arith.constant dense<0.000000e+00> : vector<32xf32>
    %25 = vector.multi_reduction <add>, %22, %cst_12 [1] : vector<32x128xf32> to vector<32xf32>
    %26 = vector.shape_cast %25 : vector<32xf32> to vector<32x1xf32>
    %27 = arith.addf %24, %26 : vector<32x1xf32>
    %c0_13 = arith.constant 0 : index
    %c0_14 = arith.constant 0 : index
    %28 = vector.load %arg8[%c0_13, %c0_14] : memref<32x1xf32, #tpu.memory_space<vmem>>, vector<32x1xf32>
    tpu.vector_store %arg8[%c0_13, %c0_14], %27 {strides = array<i32>} : memref<32x1xf32, #tpu.memory_space<vmem>>, vector<32x1xf32>,
    %c0_15 = arith.constant 0 : index
    %c0_16 = arith.constant 0 : index
    %29 = vector.load %arg9[%c0_15, %c0_16] : memref<32x1xf32, #tpu.memory_space<vmem>>, vector<32x1xf32>
    %30 = arith.mulf %19, %29 : vector<32x1xf32>
    %31 = arith.mulf %22, %8 : vector<32x128xf32>
    %cst_17 = arith.constant dense<0.000000e+00> : vector<32xf32>
    %32 = vector.multi_reduction <add>, %31, %cst_17 [1] : vector<32x128xf32> to vector<32xf32>
    %33 = vector.shape_cast %32 : vector<32xf32> to vector<32x1xf32>
    %34 = arith.addf %30, %33 : vector<32x1xf32>
    %c0_18 = arith.constant 0 : index
    %c0_19 = arith.constant 0 : index
    %35 = vector.load %arg9[%c0_18, %c0_19] : memref<32x1xf32, #tpu.memory_space<vmem>>, vector<32x1xf32>
    tpu.vector_store %arg9[%c0_18, %c0_19], %34 {strides = array<i32>} : memref<32x1xf32, #tpu.memory_space<vmem>>, vector<32x1xf32>,
    %c0_20 = arith.constant 0 : index
    %c0_21 = arith.constant 0 : index
    %36 = vector.load %arg7[%c0_20, %c0_21] : memref<32x1xf32, #tpu.memory_space<vmem>>, vector<32x1xf32>
    tpu.vector_store %arg7[%c0_20, %c0_21], %17 {strides = array<i32>} : memref<32x1xf32, #tpu.memory_space<vmem>>, vector<32x1xf32>,
    %c0_i32_22 = arith.constant 0 : i32
    %37 = arith.cmpi eq, %arg1, %c0_i32_22 : i32
    %38 = arith.extui %37 : i1 to i32
    %c0_i32_23 = arith.constant 0 : i32
    %39 = arith.cmpi ne, %38, %c0_i32_23 : i32
    scf.if %39 {
      %c0_24 = arith.constant 0 : index
      %c0_25 = arith.constant 0 : index
      %40 = vector.load %arg9[%c0_24, %c0_25] : memref<32x1xf32, #tpu.memory_space<vmem>>, vector<32x1xf32>
      %c0_26 = arith.constant 0 : index
      %c0_27 = arith.constant 0 : index
      %41 = vector.load %arg8[%c0_26, %c0_27] : memref<32x1xf32, #tpu.memory_space<vmem>>, vector<32x1xf32>
      %42 = tpu.reciprocal %41 {approx = true} : vector<32x1xf32> -> vector<32x1xf32>
      %43 = arith.mulf %40, %42 : vector<32x1xf32>
      %c0_28 = arith.constant 0 : index
      %c0_29 = arith.constant 0 : index
      %44 = vector.load %arg6[%c0_28, %c0_29] : memref<32x1xf32, #tpu.memory_space<vmem>>, vector<32x1xf32>
      tpu.vector_store %arg6[%c0_28, %c0_29], %43 {strides = array<i32>} : memref<32x1xf32, #tpu.memory_space<vmem>>, vector<32x1xf32>,
    } else {
    }
    return
  }
  func.func @transform_0(%arg0: i32, %arg1: i32) -> i32 {
    %c0_i32 = arith.constant 0 : i32
    %c0_i32_0 = arith.constant 0 : i32
    return %c0_i32 : i32
  }
  func.func @transform_1(%arg0: i32, %arg1: i32) -> (i32, i32) {
    %c0_i32 = arith.constant 0 : i32
    %c0_i32_0 = arith.constant 0 : i32
    return %arg0, %c0_i32 : i32, i32
  }
  func.func @transform_2(%arg0: i32, %arg1: i32) -> (i32, i32) {
    %c0_i32 = arith.constant 0 : i32
    return %arg0, %arg1 : i32, i32
  }
  func.func @transform_3(%arg0: i32, %arg1: i32) -> (i32, i32) {
    %c0_i32 = arith.constant 0 : i32
    return %arg0, %arg1 : i32, i32
  }
  func.func @transform_4(%arg0: i32, %arg1: i32) -> (i32, i32) {
    %c0_i32 = arith.constant 0 : i32
    %c0_i32_0 = arith.constant 0 : i32
    return %arg0, %c0_i32 : i32, i32
  }
}

</mosaic_0001>

<bundles_post_ra>
// kernel: nw_kernel_regression.1
= control target key start
LH: loop header
LB: loop body
LE: loop exit
PB: predicated region body
PF: predicated region fallthrough
CT: control target
= control target key end

     0   :  { %s974_s0 = inlined_call_operand.<no memory space> [shape: f32[1], index: 0, kind: input, shape index: {}]   ;;  %s975_s1 = inlined_call_operand.vmem [shape: f32[64,1], index: 1, kind: input, shape index: {}]   ;;  %s976_s2 = inlined_call_operand.vmem [shape: f32[64,128], index: 2, kind: input, shape index: {}]   ;;  %s977_s3 = inlined_call_operand.hbm [shape: f32[64,128], index: 3, kind: input, shape index: {}]   ;;  %s978_s4 = inlined_call_operand.vmem [shape: f32[64,1], index: 4, kind: output, shape index: {}]  }
   0x1   :  { %9 = sst [smem:[#allocation5]] %s974_s0 }
   0x2   :  { %10 = vsyncpa [#allocation7], 0 }
   0x3   :  { %12 = vsyncpa [#allocation7 + $0x1], 0  ;;  %s823_s17 = smov 0   ;;  %s825_s18 = smov 0  }
   0x4   :  { %s827_s19 = smov 0   ;;  %s829_s20 = smov 0  }
   0x5   :  { %s831_s21 = smov 0   ;;  %s833_s22 = smov 0  }
   0x6 LB: > { %s603_s0 = sadd.s32 4294967295, %s788_s22   ;;  %s30_s23 = sadd.s32 1, %s784_s21  ;;  %s788_s22 = sphi %s833_s22, %s18_s22   ;;  %s784_s21 = sphi %s831_s21, %s985_s21   ;;  %s780_s20 = sphi %s829_s20, %s984_s20   ;;  %s776_s19 = sphi %s827_s19, %s983_s19   ;;  %s772_s18 = sphi %s825_s18, %s982_s18   ;;  %s768_s17 = sphi %s823_s17, %s981_s17  }
   0x7   : > { %p32_p0 = scmp.ge.s32.totalorder %s30_s23, 2  ;;  %s114_s24 = sadd.s32 1, %s776_s19 }
   0x8   : > { %p121_p1 = scmp.ne.s32.totalorder %s776_s19, %s772_s18  ;;  %p122_p2 = scmp.eq.s32.totalorder %s788_s22, 0 }
   0x9   : > { %s987_s23 = smov (%p32_p0, %s30_s23), 0  ;;  %p127_p4 = scmp.ne.s32.totalorder %s772_s18, %s768_s17 }
   0xa   : > { %p859_p3 = por %p122_p2, %p121_p1  ;;  %s109_s26 = ssub.s32 %s784_s21, %s987_s23 }
   0xb   : > { %p128_p5 = scmp.eq.s32.totalorder %s603_s0, 0  ;;  %p112_p6 = scmp.eq.s32.totalorder %s109_s26, 0 }
   0xc   : > { %p627_p8 = scmp.lt.s32.totalorder %s788_s22, 2  ;;  %s201_s29 = sand.u32 1, %s776_s19  }
   0xd   : > { %p866_p7 = por %p128_p5, %p127_p4  ;;  %s620_s30 = sshll.u32 %s784_s21, 5 }
   0xe   : > { %s872_s28 = scalar_select %p112_p6, %s776_s19, %s114_s24  }
   0xf   : > { %s607_s5 = sshll.u32 %s201_s29, 5  ;;  %s211_s8 = scalar_lea.hbm %s977_s3, %s620_s30 }
  0x10   : > { %s212_s9 = sshll.u32 %s211_s8, 4  ;;  %s205_s10 = scalar_lea.vmem [#allocation6], %s607_s5  ;;  %s213_s9 = int_to_ptr.hbm [resolvable:$true] %s212_s9 }
  0x11   : > { %s214_s11 = sshll.u32 %s205_s10, 4  ;;  %p624_p9 = pnand %p627_p8, %p859_p3  ;;  %s215_s11 = int_to_ptr.vmem [resolvable:$true] %s214_s11 }
  0x12   : > { %p610_p10 = scmp.ge.s32.totalorder %s788_s22, 1  ;;  %p222_p11 = scmp.lt.s32.totalorder %s788_s22, 3 }
  0x13   : > { %s202_s12 = scalar_lea.sflag [#allocation7], %s201_s29  ;;  %s790_s13 = smov 128  }
  0x14   : > { %s791_s14 = smov 8   ;;  %p223_p12 = pnand %p610_p10, %p222_p11 }
  0x15   : > { %626 = dma.hbm_to_vmem [thread:$0]  (!%p624_p9), %s213_s9, 512, %s215_s11, %s202_s12, %s790_s13, %s790_s13, %s791_s14  }
  0x16   : > { %226 = sbr.rel (%p223_p12) target bundleno = 545 (0x221), region = 36  ;;  %s228_s15 = sand.u32 (!%p223_p12), 1, %s772_s18  }
  0x17   : > { %s611_s16 = sshll.u32 (!%p223_p12), %s228_s15, 5  ;;  %s229_s17 = scalar_lea.sflag (!%p223_p12), [#allocation7], %s228_s15 }
  0x18   : > { %s884_s0 = scalar_lea.vmem (!%p223_p12), [#allocation6], %s611_s16 }
  0x1b   : > { %763 = dma.done.wait (%p866_p7), %s229_s17, 512  }
  0x1c   : > { %765 = vsyncadd (%p866_p7), %s229_s17, 4294966784  ;;  %s612_s24 = sshll.u32 %s780_s20, 2  ;;  %v792_v0 = vmov 0   ;;  %vm297_vm0 = vcmask 7168   ;;  %v793_v5 = vmov -inf   ;;  %s310_s20 = sld [smem:[#allocation5]] }
  0x1d   : > { %681 = vset.pattern.permute.xlu0 %v792_v0  ;;  %p272_p13 = scmp.lt.s32.totalorder %s612_s24, 7  ;;  %682 = vset.pattern.permute.xlu1 %v792_v0  ;;  %298 = vst.msk [vmem:[#allocation2] sm:$0xff] %vm297_vm0, %v793_v5  ;;  %v794_v27 = vmov 0.0   ;;  %v321_v55 = vld [vmem:[%s884_s0] sm:$0xff]  ;;  %v323_v61 = vld [vmem:[%s884_s0 + $0x10] sm:$0xff] }
  0x1e   : > { %683 = vset.pattern.permute.xlu2 %v792_v0  ;;  %299 = vst.msk [vmem:[#allocation2 + $0x8] sm:$0xff] %vm297_vm0, %v793_v5  ;;  %v322_v0 = vld [vmem:[%s884_s0 + $0x8] sm:$0xff] }
  0x1f   : > { %s989_s24 = smov (!%p272_p13, %s612_s24), 7  ;;  %300 = vst.msk [vmem:[#allocation2 + $0x10] sm:$0xff] %vm297_vm0, %v793_v5 }
  0x20   : > { %s891_s25 = sshll.u32 %s989_s24, 3  ;;  %301 = vst.msk [vmem:[#allocation2 + $0x18] sm:$0xff] %vm297_vm0, %v793_v5 }
  0x21   : > { %s275_s30 = scalar_lea.vmem %s975_s1, %s891_s25  ;;  %s284_s7 = scalar_lea.vmem %s976_s2, %s891_s25  ;;  %302 = vst.msk [vmem:[#allocation3] sm:$0xff] %vm297_vm0, %v794_v27 }
  0x22   : > { %v313_v1 = vld [vmem:[%s275_s30] sm:$0xff]  ;;  %v315_v2 = vld [vmem:[%s275_s30 + $0x10] sm:$0xff]  ;;  %v314_v3 = vld [vmem:[%s275_s30 + $0x8] sm:$0xff]  ;;  %s311_s27 = smul.f32 -0.5, %s310_s20  ;;  %303 = vst.msk [vmem:[#allocation3 + $0x8] sm:$0xff] %vm297_vm0, %v794_v27  ;;  %s942_s11 = scalar_lea.vmem %s978_s4, %s891_s25 }
  0x23   : > { %327 = vperm.xlu0 %681, %v313_v1   ;;  %337 = vperm.xlu1 %682, %v315_v2   ;;  %v316_v4 = vld [vmem:[%s275_s30 + $0x18] sm:$0xff]  ;;  %v317_v6 = vld [vmem:[%s284_s7] sm:$0xff]  ;;  %v319_v7 = vld [vmem:[%s284_s7 + $0x10] sm:$0xff]  ;;  %304 = vst.msk [vmem:[#allocation3 + $0x10] sm:$0xff] %vm297_vm0, %v794_v27 }
  0x24   : > { %s312_s8 = smul.f32 %s311_s27, %s310_s20  ;;  %v318_v17 = vld [vmem:[%s284_s7 + $0x8] sm:$0xff]  ;;  %v320_v18 = vld [vmem:[%s284_s7 + $0x18] sm:$0xff]  ;;  %305 = vst.msk [vmem:[#allocation3 + $0x18] sm:$0xff] %vm297_vm0, %v794_v27  ;;  %v358_v28 = vld [vmem:[#allocation2] sm:$0xff] }
  0x25   : > { %306 = vst.msk [vmem:[#allocation4] sm:$0xff] %vm297_vm0, %v794_v27  ;;  %v359_v36 = vld [vmem:[#allocation2 + $0x8] sm:$0xff]  ;;  %v324_v2 = vld [vmem:[%s884_s0 + $0x18] sm:$0xff] }
  0x26   : > { %v353_v12 = vstv %s312_s8  ;;  %307 = vst.msk [vmem:[#allocation4 + $0x8] sm:$0xff] %vm297_vm0, %v794_v27  ;;  %v913_v29 = vld [vmem:[#allocation2 + $0x10] sm:$0xff] }
  0x27   : > { %308 = vst.msk [vmem:[#allocation4 + $0x10] sm:$0xff] %vm297_vm0, %v794_v27  ;;  %v923_v37 = vld [vmem:[#allocation2 + $0x18] sm:$0xff] }
  0x28   : > { %309 = vst.msk [vmem:[#allocation4 + $0x18] sm:$0xff] %vm297_vm0, %v794_v27 }
  0x2b   : > { %332 = vperm.xlu0 %681, %v314_v3   ;;  %342 = vperm.xlu1 %682, %v316_v4  }
  0x95   : > { %v328_v8 = vpop.permute.xlu0 %327  ;;  %v338_v9 = vpop.permute.xlu1 %337 }
  0x96   : > { %v345_v10 = vsub.f32 %v328_v8, %v317_v6  ;;  %v347_v11 = vsub.f32 %v338_v9, %v319_v7  ;;  %v418_v7 = vld [vmem:[#allocation3] sm:$0xff] }
  0x98   : > { %v349_v13 = vmul.f32 %v345_v10, %v345_v10  ;;  %v351_v14 = vmul.f32 %v347_v11, %v347_v11 }
  0x9a   : > { %v354_v15 = vmul.f32 %v353_v12, %v349_v13  ;;  %v356_v16 = vmul.f32 %v353_v12, %v351_v14  ;;  %v419_v13 = vld [vmem:[#allocation3 + $0x8] sm:$0xff] }
  0x9c   : > { %362 = vmax.xlane.f32.xlu2 %v354_v15  ;;  %366 = vmax.xlane.f32.xlu0 %v356_v16 }
  0x9d   : > { %v333_v19 = vpop.permute.xlu0 %332  ;;  %v343_v20 = vpop.permute.xlu1 %342 }
  0x9e   : > { %v346_v21 = vsub.f32 %v333_v19, %v318_v17  ;;  %v348_v22 = vsub.f32 %v343_v20, %v320_v18  ;;  %v443_v19 = vld [vmem:[#allocation4] sm:$0xff]  ;;  %v420_v20 = vld [vmem:[#allocation3 + $0x10] sm:$0xff] }
  0xa0   : > { %v350_v23 = vmul.f32 %v346_v21, %v346_v21  ;;  %v352_v24 = vmul.f32 %v348_v22, %v348_v22 }
  0xa2   : > { %v355_v25 = vmul.f32 %v353_v12, %v350_v23  ;;  %v357_v26 = vmul.f32 %v353_v12, %v352_v24 }
  0xa4   : > { %364 = vmax.xlane.f32.xlu2 %v355_v25  ;;  %368 = vmax.xlane.f32.xlu1 %v357_v26 }
 0x10f   : > { %v363_v30 = vpop.xlane.xlu2 %362  ;;  %v367_v31 = vpop.xlane.xlu0 %366 }
 0x110   : > { %v370_v32 = vmax.f32 %v358_v28, %v363_v30  ;;  %v916_v33 = vmax.f32 %v913_v29, %v367_v31  ;;  %v421_v30 = vld [vmem:[#allocation3 + $0x18] sm:$0xff] }
 0x112   : > { %v374_v34 = vsub.f32 %v358_v28, %v370_v32  ;;  %471 = vst.msk [vmem:[#allocation2] sm:$0xff] %vm297_vm0, %v370_v32  ;;  %388 = vperm.xlu2 %683, %v370_v32   ;;  %v376_v35 = vsub.f32 %v913_v29, %v916_v33  ;;  %v445_v29 = vld [vmem:[#allocation4 + $0x10] sm:$0xff] }
 0x113   : > { %473 = vst.msk [vmem:[#allocation2 + $0x10] sm:$0xff] %vm297_vm0, %v916_v33 }
 0x114   : > { %v378_v4 = vmul.f32 1.442695, %v374_v34  ;;  %v382_v11 = vmul.f32 1.442695, %v376_v35 }
 0x117   : > { %v365_v38 = vpop.xlane.xlu2 %364  ;;  %v369_v39 = vpop.xlane.xlu1 %368 }
 0x118   : > { %v371_v40 = vmax.f32 %v359_v36, %v365_v38  ;;  %v373_v41 = vmax.f32 %v923_v37, %v369_v39 }
 0x11a   : > { %v375_v42 = vsub.f32 %v359_v36, %v371_v40  ;;  %472 = vst.msk [vmem:[#allocation2 + $0x8] sm:$0xff] %vm297_vm0, %v371_v40  ;;  %393 = vperm.xlu2 %683, %v371_v40   ;;  %v377_v43 = vsub.f32 %v923_v37, %v373_v41  ;;  %v444_v40 = vld [vmem:[#allocation4 + $0x8] sm:$0xff] }
 0x11b   : > { %474 = vst.msk [vmem:[#allocation2 + $0x18] sm:$0xff] %vm297_vm0, %v373_v41 }
 0x11c   : > { %v380_v5 = vmul.f32 1.442695, %v375_v42  ;;  %v384_v17 = vmul.f32 1.442695, %v377_v43 }
 0x122   : > { %398 = vperm.xlu2 %683, %v916_v33  }
 0x12a   : > { %403 = vperm.xlu2 %683, %v373_v41  }
 0x16c   : > { %v389_v44 = vpop.permute.xlu2 %388 }
 0x16d   : > { %v406_v45 = vsub.f32 %v354_v15, %v389_v44 }
 0x16f   : > { %v410_v46 = vmul.f32 1.442695, %v406_v45 }
 0x171   : > { %684 = vpow2.f32 %v410_v46  ;;  %v446_v46 = vld [vmem:[#allocation4 + $0x18] sm:$0xff] }
 0x174   : > { %v394_v47 = vpop.permute.xlu2 %393 }
 0x175   : > { %v407_v48 = vsub.f32 %v355_v25, %v394_v47 }
 0x177   : > { %v685_v49 = vpop.eup %684  ;;  %v412_v50 = vmul.f32 1.442695, %v407_v48 }
 0x178   : > { %426 = vadd.xlane.f32.xlu0 %v685_v49  ;;  %v451_v58 = vmul.f32 %v685_v49, %v321_v55 }
 0x179   : > { %686 = vpow2.f32 %v412_v50 }
 0x17c   : > { %v399_v51 = vpop.permute.xlu2 %398 }
 0x17d   : > { %v408_v52 = vsub.f32 %v356_v16, %v399_v51 }
 0x17f   : > { %v687_v53 = vpop.eup %686  ;;  %v414_v54 = vmul.f32 1.442695, %v408_v52 }
 0x180   : > { %428 = vadd.xlane.f32.xlu1 %v687_v53  ;;  %v452_v1 = vmul.f32 %v687_v53, %v322_v0 }
 0x181   : > { %688 = vpow2.f32 %v414_v54 }
 0x184   : > { %v404_v56 = vpop.permute.xlu2 %403 }
 0x185   : > { %v409_v57 = vsub.f32 %v357_v26, %v404_v56 }
 0x187   : > { %v689_v59 = vpop.eup %688  ;;  %v416_v60 = vmul.f32 1.442695, %v409_v57 }
 0x188   : > { %455 = vadd.xlane.f32.xlu1 %v451_v58  ;;  %430 = vadd.xlane.f32.xlu2 %v689_v59  ;;  %v453_v62 = vmul.f32 %v689_v59, %v323_v61 }
 0x189   : > { %690 = vpow2.f32 %v416_v60 }
 0x18a   : > { %692 = vpow2.f32 %v378_v4 }
 0x18b   : > { %694 = vpow2.f32 %v380_v5 }
 0x18c   : > { %696 = vpow2.f32 %v382_v11 }
 0x18d   : > { %698 = vpow2.f32 %v384_v17 }
 0x18f   : > { %v691_v63 = vpop.eup %690 }
 0x190   : > { %459 = vadd.xlane.f32.xlu1 %v453_v62  ;;  %432 = vadd.xlane.f32.xlu0 %v691_v63  ;;  %v454_v3 = vmul.f32 %v691_v63, %v324_v2  ;;  %v693_v6 = vpop.eup %692 }
 0x191   : > { %v422_v8 = vmul.f32 %v693_v6, %v418_v7  ;;  %v695_v12 = vpop.eup %694  ;;  %v447_v21 = vmul.f32 %v693_v6, %v443_v19 }
 0x192   : > { %v423_v14 = vmul.f32 %v695_v12, %v419_v13  ;;  %v697_v18 = vpop.eup %696  ;;  %v448_v41 = vmul.f32 %v695_v12, %v444_v40 }
 0x193   : > { %v424_v22 = vmul.f32 %v697_v18, %v420_v20  ;;  %v699_v28 = vpop.eup %698  ;;  %v449_v31 = vmul.f32 %v697_v18, %v445_v29 }
 0x194   : > { %v425_v32 = vmul.f32 %v699_v28, %v421_v30  ;;  %v450_v47 = vmul.f32 %v699_v28, %v446_v46 }
 0x198   : > { %457 = vadd.xlane.f32.xlu0 %v452_v1 }
 0x1a0   : > { %461 = vadd.xlane.f32.xlu0 %v454_v3 }
 0x1eb   : > { %v427_v9 = vpop.xlane.xlu0 %426 }
 0x1ec   : > { %v434_v10 = vadd.f32 %v427_v9, %v422_v8 }
 0x1ee   : > { %439 = vst.msk [vmem:[#allocation3] sm:$0xff] %vm297_vm0, %v434_v10 }
 0x1f3   : > { %v429_v15 = vpop.xlane.xlu1 %428 }
 0x1f4   : > { %v435_v16 = vadd.f32 %v429_v15, %v423_v14 }
 0x1f5   : > { %v482_v25 = vld [vmem:[#allocation3] sm:$0xff] }
 0x1f6   : > { %440 = vst.msk [vmem:[#allocation3 + $0x8] sm:$0xff] %vm297_vm0, %v435_v16  ;;  %700 = vrcp.f32 %v482_v25 }
 0x1fb   : > { %v456_v23 = vpop.xlane.xlu1 %455  ;;  %v431_v24 = vpop.xlane.xlu2 %430 }
 0x1fc   : > { %v463_v26 = vadd.f32 %v456_v23, %v447_v21  ;;  %v436_v27 = vadd.f32 %v431_v24, %v424_v22  ;;  %v701_v37 = vpop.eup %700 }
 0x1fd   : > { %v483_v44 = vld [vmem:[#allocation3 + $0x8] sm:$0xff] }
 0x1fe   : > { %467 = vst.msk [vmem:[#allocation4] sm:$0xff] %vm297_vm0, %v463_v26 }
 0x1ff   : > { %441 = vst.msk [vmem:[#allocation3 + $0x10] sm:$0xff] %vm297_vm0, %v436_v27 }
 0x203   : > { %v460_v33 = vpop.xlane.xlu1 %459  ;;  %v433_v34 = vpop.xlane.xlu0 %432 }
 0x204   : > { %v465_v35 = vadd.f32 %v460_v33, %v449_v31  ;;  %v437_v36 = vadd.f32 %v433_v34, %v425_v32 }
 0x205   : > { %v478_v38 = vld [vmem:[#allocation4] sm:$0xff] }
 0x206   : > { %v490_v39 = vmul.f32 %v701_v37, %v478_v38  ;;  %469 = vst.msk [vmem:[#allocation4 + $0x10] sm:$0xff] %vm297_vm0, %v465_v35  ;;  %v484_v42 = vld [vmem:[#allocation3 + $0x10] sm:$0xff] }
 0x207   : > { %442 = vst.msk [vmem:[#allocation3 + $0x18] sm:$0xff] %vm297_vm0, %v437_v36  ;;  %702 = vrcp.f32 %v484_v42 }
 0x208   : > { %494 = vst.msk [vmem:[%s942_s11] sm:$0xff] %vm297_vm0, %v490_v39  ;;  %704 = vrcp.f32 %v483_v44 }
 0x20b   : > { %v458_v43 = vpop.xlane.xlu0 %457 }
 0x20c   : > { %v464_v45 = vadd.f32 %v458_v43, %v448_v41 }
 0x20d   : > { %v703_v49 = vpop.eup %702  ;;  %v480_v50 = vld [vmem:[#allocation4 + $0x10] sm:$0xff] }
 0x20e   : > { %468 = vst.msk [vmem:[#allocation4 + $0x8] sm:$0xff] %vm297_vm0, %v464_v45  ;;  %v485_v51 = vld [vmem:[#allocation3 + $0x18] sm:$0xff]  ;;  %v705_v53 = vpop.eup %704  ;;  %v492_v56 = vmul.f32 %v703_v49, %v480_v50 }
 0x20f   : > { %706 = vrcp.f32 %v485_v51 }
 0x210   : > { %496 = vst.msk [vmem:[%s942_s11 + $0x10] sm:$0xff] %vm297_vm0, %v492_v56 }
 0x213   : > { %v462_v48 = vpop.xlane.xlu0 %461 }
 0x214   : > { %v466_v52 = vadd.f32 %v462_v48, %v450_v47 }
 0x215   : > { %v479_v54 = vld [vmem:[#allocation4 + $0x8] sm:$0xff]  ;;  %v707_v57 = vpop.eup %706 }
 0x216   : > { %v491_v55 = vmul.f32 %v705_v53, %v479_v54  ;;  %470 = vst.msk [vmem:[#allocation4 + $0x18] sm:$0xff] %vm297_vm0, %v466_v52 }
 0x218   : > { %495 = vst.msk [vmem:[%s942_s11 + $0x8] sm:$0xff] %vm297_vm0, %v491_v55 }
 0x21d   : > { %v481_v58 = vld [vmem:[#allocation4 + $0x18] sm:$0xff] }
 0x21e   : > { %v493_v59 = vmul.f32 %v707_v57, %v481_v58 }
 0x220   : > { %497 = vst.msk [vmem:[%s942_s11 + $0x18] sm:$0xff] %vm297_vm0, %v493_v59 }
 0x221 PF: > { %s18_s22 = sadd.s32 1, %s788_s22   ;;  %s981_s17 = smov %s772_s18 }
 0x222   : > { %p15_p0 = scmp.ge.s32.totalorder %s18_s22, 4   ;;  %s982_s18 = smov %s776_s19 }
 0x223   : > { %s983_s19 = smov %s872_s28  ;;  %s984_s20 = smov %s784_s21 }
 0x224   : > { %s985_s21 = smov %s987_s23  ;;  %17 = sbr.rel (!%p15_p0) target bundleno = 6 (0x6), region = 90 }
 0x229   :  { %520 = vsyncpa [#allocation7], 1 }
 0x22a   :  { %522 = vsyncpa [#allocation7 + $0x1], 1 }

</bundles_post_ra>
